<compile_context>
chip_gen: v7x
topology: tpu7x:2x2x1
jax: 0.10.0
libtpu: 0.0.40
codegen_flags: <defaults>
</compile_context>

<pallas_src>
import jax
import jax.numpy as jnp
from jax.experimental import pallas as pl
from jax.experimental.pallas import tpu as pltpu

# ---- small, module-consistent configuration ----
BSZ, LENGTH = 2, 8        # batch, sequence length
D = 32                    # input_size (emb dim)
H = 64                    # head_size (expert & gate hidden dim)
E = 8                     # num_experts (routed)
E1 = E + 1                # routed experts + shared expert (stacked together)
K = 2                     # top-k
TASK_NUM = 9

# Tokens per grid step (matmul M-dim).  Toy: 8 -> the grid has 2 steps so both
# v7x TensorCores get work.  Production: 128 (v5e) / 256+ (v6e, v7x).  Keep
# LENGTH % TOKEN_TILE == 0 so every tile lies inside one batch row (per-tile
# alpha); otherwise switch the alpha prefetch to per-token.
TOKEN_TILE = 8

_SQRT_2_OVER_PI = 0.7978845608028654
_INV_SQRT_2 = 0.7071067811865476


def _gelu_tanh(x):
    # nn.GELU(approximate='tanh')  (used inside the experts' Mlp)
    return 0.5 * x * (1.0 + jnp.tanh(_SQRT_2_OVER_PI * (x + 0.044715 * x * x * x)))


def _gelu_exact(x):
    # nn.GELU()  (the gating activation) -- kept exact (erf) for fidelity.
    return 0.5 * x * (1.0 + jax.lax.erf(x * _INV_SQRT_2))


def _topk_mask(scores, k):
    """Boolean mask of the top-k entries per row (ties -> lowest index, like torch.topk)."""
    t, e = scores.shape
    col = jax.lax.broadcasted_iota(jnp.int32, (t, e), 1)
    mask = jnp.zeros((t, e), dtype=jnp.bool_)
    vals = scores
    for _ in range(k):                                   # k is tiny & static
        m = jnp.max(vals, axis=-1, keepdims=True)
        is_max = vals == m
        idx = jnp.min(jnp.where(is_max, col, e), axis=-1, keepdims=True)
        sel = col == idx
        mask = jnp.logical_or(mask, sel)
        vals = jnp.where(sel, -jnp.inf, vals)
    return mask


def moe_kernel(alpha_sm,                                  # scalar prefetch: (num_tiles,) sigmoid(alpha) in SMEM
               x_ref,                                     # (TT, D) f32 tokens
               wg1_ref, bg1_ref, wg2_ref, bg2_ref,        # gate weights/biases (f32)
               spread_ref, shared_ref,                    # grid-invariant lane-combine constants
               w1_ref, b1_ref, w2_ref, b2_ref,            # stacked expert weights (bf16) + biases (f32)
               out_ref):
    x = x_ref[...]                                        # (TT, D) f32
    tt = x.shape[0]
    hi = jax.lax.Precision.HIGHEST

    # ---- gate (f32, HIGHEST precision so top-k matches a full-precision reference) ----
    g = _gelu_exact(jnp.dot(x, wg1_ref[...], precision=hi,
                            preferred_element_type=jnp.float32) + bg1_ref[...])
    logits = jnp.dot(g, wg2_ref[...], precision=hi,
                     preferred_element_type=jnp.float32) + bg2_ref[...]
    # softmax is strictly monotone per row -> top-k(softmax(logits)) == top-k(logits),
    # and the forward uses an UNWEIGHTED routed sum, so the exp/normalize is skipped.
    mask_f = _topk_mask(logits, K).astype(jnp.float32)    # (TT, E)

    # ---- per-tile alpha from SMEM scalar prefetch (already sigmoided in wrapper) ----
    alpha = jnp.full((tt, 1), alpha_sm[pl.program_id(0)], dtype=jnp.float32)

    # ---- per-lane combine weights over E routed slots + 1 shared slot ----
    # spread (E, E1*H) and shared (1, E1*H) are grid-invariant constants built
    # once in pack_params; only the tiny mask @ spread MXU op runs per step.
    routed_w = jnp.dot(mask_f, spread_ref[...], preferred_element_type=jnp.float32)  # (TT, E1*H)
    w_wide = alpha * routed_w + (1.0 - alpha) * shared_ref[...]                      # (TT, E1*H)

    # ---- all E+1 expert MLPs as two stacked matmuls (bf16 MXU, f32 accumulate) ----
    xb = x.astype(w1_ref.dtype)                                                 # bf16
    h = jnp.dot(xb, w1_ref[...], preferred_element_type=jnp.float32) + b1_ref[...]   # (TT, E1*H)
    h = _gelu_tanh(h)                                                           # f32 activations
    hw = (h * w_wide).astype(w2_ref.dtype)                                      # bf16
    y = jnp.dot(hw, w2_ref[...], preferred_element_type=jnp.float32)            # (TT, D)

    # ---- fc2 biases, alpha/mask weighted: alpha*(mask @ b2_experts) + (1-alpha)*b2_shared ----
    bias = (alpha * jnp.dot(mask_f, b2_ref[:E, :], preferred_element_type=jnp.float32)
            + (1.0 - alpha) * b2_ref[E:, :])
    # NOTE: D=32 < 128 lanes -> masked store at toy scale; production emb dims
    # are multiples of 128 so the store is unmasked there (see TODO at top).
    out_ref[...] = (y + bias).astype(out_ref.dtype)


def pack_params(params):
    """One-time packing of module weights into the kernel's fused layout.

    Called once at model load (NOT in the per-call path), so the transposes,
    concats and bf16 casts never touch HBM on the inference hot path.
    """
    d = D
    # stacked fc1: routed experts (expert-major column blocks) then the shared expert.
    w1_r = params["w1"].transpose(1, 0, 2).reshape(d, E * H)                        # (D, E*H)
    w1_all = jnp.concatenate([w1_r, params["ws1"]], axis=1).astype(jnp.bfloat16)    # (D, E1*H)
    b1_all = jnp.concatenate([params["b1"].reshape(1, E * H), params["bs1"]], axis=1)  # (1, E1*H)
    # stacked fc2 weights and (E1, D) bias matrix (row E1-1 = shared expert).
    w2_all = jnp.concatenate([params["w2"].reshape(E * H, d), params["ws2"]],
                             axis=0).astype(jnp.bfloat16)                           # (E1*H, D)
    b2_all = jnp.concatenate([params["b2"].reshape(E, d), params["bs2"]], axis=0)   # (E1, D)
    # grid-invariant lane-combine constants (hoisted out of the kernel):
    # lane j of the stacked hidden belongs to expert j // H.
    lane_e = jnp.arange(E1 * H, dtype=jnp.int32) // H
    spread = (lane_e[None, :] == jnp.arange(E, dtype=jnp.int32)[:, None]).astype(jnp.float32)  # (E, E1*H)
    shared_w = (lane_e[None, :] >= E).astype(jnp.float32)                           # (1, E1*H)
    return dict(
        wg1=params["wg1"].astype(jnp.float32), bg1=params["bg1"].astype(jnp.float32),
        wg2=params["wg2"].astype(jnp.float32), bg2=params["bg2"].astype(jnp.float32),
        spread=spread, shared_w=shared_w,
        w1=w1_all, b1=b1_all.astype(jnp.float32),
        w2=w2_all, b2=b2_all.astype(jnp.float32),
        task_alphas=params["task_alphas"].astype(jnp.float32),
    )


def deepseek_moe_forward(x, task_ids, packed):
    """x: (bsz, length, D) f32; task_ids: (bsz,) int32; packed: pack_params(...) output."""
    bsz, length, d = x.shape
    n = bsz * length
    assert length % TOKEN_TILE == 0, "tile must stay within one batch row for per-tile alpha"
    tiles_per_batch = length // TOKEN_TILE
    num_tiles = n // TOKEN_TILE

    # Per-tile alpha (sigmoid done here; broadcast happens in-kernel from SMEM).
    tile_batch = jnp.arange(num_tiles, dtype=jnp.int32) // tiles_per_batch
    alpha_tile = jax.nn.sigmoid(packed["task_alphas"][task_ids])[tile_batch].astype(jnp.float32)

    token_map = lambda t, a: (t, 0)      # a = scalar-prefetch ref (unused in the map)
    const_map = lambda t, a: (0, 0)      # weights/constants: resident, never re-fetched

    out = pl.pallas_call(
        moe_kernel,
        out_shape=jax.ShapeDtypeStruct((n, d), x.dtype),
        grid_spec=pltpu.PrefetchScalarGridSpec(
            num_scalar_prefetch=1,                        # per-tile sigmoid(alpha) -> SMEM
            grid=(num_tiles,),
            in_specs=[
                pl.BlockSpec((TOKEN_TILE, d), token_map),     # x tokens
                pl.BlockSpec((d, H), const_map),              # gate fc1 weight
                pl.BlockSpec((1, H), const_map),              # gate fc1 bias
                pl.BlockSpec((H, E), const_map),              # gate fc2 weight
                pl.BlockSpec((1, E), const_map),              # gate fc2 bias
                pl.BlockSpec((E, E1 * H), const_map),         # mask -> lane spread (constant)
                pl.BlockSpec((1, E1 * H), const_map),         # shared-lane indicator (constant)
                pl.BlockSpec((d, E1 * H), const_map),         # stacked fc1 weight (bf16)
                pl.BlockSpec((1, E1 * H), const_map),         # stacked fc1 bias
                pl.BlockSpec((E1 * H, d), const_map),         # stacked fc2 weight (bf16)
                pl.BlockSpec((E1, d), const_map),             # stacked fc2 biases
            ],
            out_specs=pl.BlockSpec((TOKEN_TILE, d), token_map),
        ),
        compiler_params=pltpu.CompilerParams(
            dimension_semantics=("parallel",),            # token tiles shard over v7x's 2 TCs
            # toy weights are tiny; at production keep <=~48 MiB on v7x (64 MiB VMEM),
            # and raise toward ~100 MiB on v6e to keep stacked weights resident.
            vmem_limit_bytes=32 * 1024 * 1024,
        ),
    )(alpha_tile, x.reshape(n, d),
      packed["wg1"], packed["bg1"], packed["wg2"], packed["bg2"],
      packed["spread"], packed["shared_w"],
      packed["w1"], packed["b1"], packed["w2"], packed["b2"])
    return out.reshape(bsz, length, d)


def reference_forward(x, task_ids, params):
    """Pure-JAX reference mirroring the torch forward (eval mode)."""
    hi = jax.lax.Precision.HIGHEST
    bsz, length, d = x.shape
    xf = x.reshape(-1, d)
    g = _gelu_exact(jnp.dot(xf, params["wg1"], precision=hi) + params["bg1"])
    logits = jnp.dot(g, params["wg2"], precision=hi) + params["bg2"]
    probs = jax.nn.softmax(logits, axis=-1)
    mask = _topk_mask(probs, K)
    y = jnp.zeros_like(xf)
    for e in range(E):
        h = _gelu_tanh(jnp.dot(xf, params["w1"][e], precision=hi) + params["b1"][e])
        oe = jnp.dot(h, params["w2"][e], precision=hi) + params["b2"][e]
        y = y + jnp.where(mask[:, e:e + 1], oe, 0.0)
    hs = _gelu_tanh(jnp.dot(xf, params["ws1"], precision=hi) + params["bs1"])
    shared = jnp.dot(hs, params["ws2"], precision=hi) + params["bs2"]
    alpha = jax.nn.sigmoid(jnp.repeat(params["task_alphas"][task_ids], length).reshape(-1, 1))
    return (alpha * y + (1.0 - alpha) * shared).reshape(bsz, length, d)


if __name__ == "__main__":
    key = jax.random.PRNGKey(0)
    ks = jax.random.split(key, 16)
    init = lambda k, shape, s: jax.random.normal(k, shape, jnp.float32) * s

    # Deterministic synthetic parameters (shapes per the module __init__).
    # NOTE: the torch module zero-inits the final gate Linear weight; we use
    # small random values so routing is non-trivial.
    params = {
        "wg1": init(ks[0], (D, H), 0.5),   "bg1": init(ks[1], (1, H), 0.1),
        "wg2": init(ks[2], (H, E), 0.5),   "bg2": init(ks[3], (1, E), 0.1),
        "w1":  init(ks[4], (E, D, H), 0.1), "b1": init(ks[5], (E, 1, H), 0.05),
        "w2":  init(ks[6], (E, H, D), 0.1), "b2": init(ks[7], (E, 1, D), 0.05),
        "ws1": init(ks[8], (D, H), 0.1),   "bs1": init(ks[9], (1, H), 0.05),
        "ws2": init(ks[10], (H, D), 0.1),  "bs2": init(ks[11], (1, D), 0.05),
        "task_alphas": init(ks[12], (TASK_NUM,), 0.5),
    }

    x = jax.random.normal(ks[13], (BSZ, LENGTH, D), jnp.float32)
    task_ids = jnp.array([1, 3], dtype=jnp.int32)

    packed = pack_params(params)                     # one-time packing (model load)
    fwd = jax.jit(deepseek_moe_forward)
    y = fwd(x, task_ids, packed)
    y = jax.block_until_ready(y)

    y_ref = reference_forward(x, task_ids, params)
    assert y.shape == (BSZ, LENGTH, D)
    assert jnp.allclose(y, y_ref, atol=2e-2, rtol=2e-2), "Pallas kernel mismatch vs reference"
    print("KERNEL_OK")
</pallas_src>

<mosaic_0001>
module attributes {stable_mosaic.version = 11 : i64} {
  func.func @moe_kernel(%arg0: i32, %arg1: memref<2xf32, #tpu.memory_space<smem>>, %arg2: memref<8x32xf32, #tpu.memory_space<vmem>>, %arg3: memref<32x64xf32, #tpu.memory_space<vmem>>, %arg4: memref<1x64xf32, #tpu.memory_space<vmem>>, %arg5: memref<64x8xf32, #tpu.memory_space<vmem>>, %arg6: memref<1x8xf32, #tpu.memory_space<vmem>>, %arg7: memref<8x576xf32, #tpu.memory_space<vmem>>, %arg8: memref<1x576xf32, #tpu.memory_space<vmem>>, %arg9: memref<32x576xbf16, #tpu.memory_space<vmem>>, %arg10: memref<1x576xf32, #tpu.memory_space<vmem>>, %arg11: memref<576x32xbf16, #tpu.memory_space<vmem>>, %arg12: memref<9x32xf32, #tpu.memory_space<vmem>>, %arg13: memref<8x32xf32, #tpu.memory_space<vmem>>) attributes {dimension_semantics = [#tpu.dimension_semantics<parallel>], iteration_bounds = array<i64: 2>, scalar_prefetch = 1 : i64, scratch_operands = 0 : i64, tpu.core_type = #tpu.core_type<tc>, window_params = [{transform_indices = @transform_0, window_bounds = array<i64: 8, 32>}, {pipeline_mode = #tpu.pipeline_mode<synchronous>, transform_indices = @transform_1, window_bounds = array<i64: 32, 64>}, {pipeline_mode = #tpu.pipeline_mode<synchronous>, transform_indices = @transform_2, window_bounds = array<i64: 1, 64>}, {pipeline_mode = #tpu.pipeline_mode<synchronous>, transform_indices = @transform_3, window_bounds = array<i64: 64, 8>}, {pipeline_mode = #tpu.pipeline_mode<synchronous>, transform_indices = @transform_4, window_bounds = array<i64: 1, 8>}, {pipeline_mode = #tpu.pipeline_mode<synchronous>, transform_indices = @transform_5, window_bounds = array<i64: 8, 576>}, {pipeline_mode = #tpu.pipeline_mode<synchronous>, transform_indices = @transform_6, window_bounds = array<i64: 1, 576>}, {pipeline_mode = #tpu.pipeline_mode<synchronous>, transform_indices = @transform_7, window_bounds = array<i64: 32, 576>}, {pipeline_mode = #tpu.pipeline_mode<synchronous>, transform_indices = @transform_8, window_bounds = array<i64: 1, 576>}, {pipeline_mode = #tpu.pipeline_mode<synchronous>, transform_indices = @transform_9, window_bounds = array<i64: 576, 32>}, {pipeline_mode = #tpu.pipeline_mode<synchronous>, transform_indices = @transform_10, window_bounds = array<i64: 9, 32>}, {transform_indices = @transform_11, window_bounds = array<i64: 8, 32>}]} {
    %c0 = arith.constant 0 : index
    %c0_0 = arith.constant 0 : index
    %0 = vector.load %arg2[%c0, %c0_0] : memref<8x32xf32, #tpu.memory_space<vmem>>, vector<8x32xf32>
    %c0_1 = arith.constant 0 : index
    %c0_2 = arith.constant 0 : index
    %1 = vector.load %arg3[%c0_1, %c0_2] : memref<32x64xf32, #tpu.memory_space<vmem>>, vector<32x64xf32>
    %cst = arith.constant dense<0.000000e+00> : vector<8x64xf32>
    %2 = tpu.matmul %0, %1, %cst {dimension_numbers = #tpu.dot_dimension_numbers<[1], [0], [0], [1], [0, 0, 1, 1], [], []>, precision = #tpu.contract_precision<fp32>} : vector<8x32xf32>, vector<32x64xf32>, vector<8x64xf32> -> vector<8x64xf32>
    %c0_3 = arith.constant 0 : index
    %c0_4 = arith.constant 0 : index
    %3 = vector.load %arg4[%c0_3, %c0_4] : memref<1x64xf32, #tpu.memory_space<vmem>>, vector<1x64xf32>
    %4 = vector.broadcast %3 : vector<1x64xf32> to vector<8x64xf32>
    %5 = arith.addf %2, %4 : vector<8x64xf32>
    %cst_5 = arith.constant 5.000000e-01 : f32
    %6 = vector.broadcast %cst_5 : f32 to vector<8x64xf32>
    %7 = arith.mulf %6, %5 : vector<8x64xf32>
    %cst_6 = arith.constant 0.707106769 : f32
    %8 = vector.broadcast %cst_6 : f32 to vector<8x64xf32>
    %9 = arith.mulf %5, %8 : vector<8x64xf32>
    %10 = math.erf %9 : vector<8x64xf32>
    %cst_7 = arith.constant 1.000000e+00 : f32
    %11 = vector.broadcast %cst_7 : f32 to vector<8x64xf32>
    %12 = arith.addf %11, %10 : vector<8x64xf32>
    %13 = arith.mulf %7, %12 : vector<8x64xf32>
    %c0_8 = arith.constant 0 : index
    %c0_9 = arith.constant 0 : index
    %14 = vector.load %arg5[%c0_8, %c0_9] : memref<64x8xf32, #tpu.memory_space<vmem>>, vector<64x8xf32>
    %cst_10 = arith.constant dense<0.000000e+00> : vector<8x8xf32>
    %15 = tpu.matmul %13, %14, %cst_10 {dimension_numbers = #tpu.dot_dimension_numbers<[1], [0], [0], [1], [0, 0, 1, 1], [], []>, precision = #tpu.contract_precision<fp32>} : vector<8x64xf32>, vector<64x8xf32>, vector<8x8xf32> -> vector<8x8xf32>
    %c0_11 = arith.constant 0 : index
    %c0_12 = arith.constant 0 : index
    %16 = vector.load %arg6[%c0_11, %c0_12] : memref<1x8xf32, #tpu.memory_space<vmem>>, vector<1x8xf32>
    %17 = vector.broadcast %16 : vector<1x8xf32> to vector<8x8xf32>
    %18 = arith.addf %15, %17 : vector<8x8xf32>
    %19 = tpu.iota {dimensions = array<i32: 1>} : vector<8x8xi32>
    %false = arith.constant false
    %20 = vector.broadcast %false : i1 to vector<8x8xi1>
    %cst_13 = arith.constant dense<0xFF800000> : vector<8xf32>
    %21 = vector.multi_reduction <maximumf>, %18, %cst_13 [1] : vector<8x8xf32> to vector<8xf32>
    %22 = vector.shape_cast %21 : vector<8xf32> to vector<8x1xf32>
    %23 = vector.broadcast %22 : vector<8x1xf32> to vector<8x8xf32>
    %24 = arith.cmpf oeq, %18, %23 : vector<8x8xf32>
    %c8_i32 = arith.constant 8 : i32
    %25 = vector.broadcast %c8_i32 : i32 to vector<8x8xi32>
    %26 = arith.select %24, %19, %25 : vector<8x8xi1>, vector<8x8xi32>
    %cst_14 = arith.constant dense<2147483647> : vector<8xi32>
    %27 = vector.multi_reduction <minsi>, %26, %cst_14 [1] : vector<8x8xi32> to vector<8xi32>
    %28 = vector.shape_cast %27 : vector<8xi32> to vector<8x1xi32>
    %29 = vector.broadcast %28 : vector<8x1xi32> to vector<8x8xi32>
    %30 = arith.cmpi eq, %19, %29 : vector<8x8xi32>
    %31 = arith.ori %20, %30 : vector<8x8xi1>
    %cst_15 = arith.constant 0xFF800000 : f32
    %32 = vector.broadcast %cst_15 : f32 to vector<8x8xf32>
    %33 = arith.select %30, %32, %18 : vector<8x8xi1>, vector<8x8xf32>
    %cst_16 = arith.constant dense<0xFF800000> : vector<8xf32>
    %34 = vector.multi_reduction <maximumf>, %33, %cst_16 [1] : vector<8x8xf32> to vector<8xf32>
    %35 = vector.shape_cast %34 : vector<8xf32> to vector<8x1xf32>
    %36 = vector.broadcast %35 : vector<8x1xf32> to vector<8x8xf32>
    %37 = arith.cmpf oeq, %33, %36 : vector<8x8xf32>
    %c8_i32_17 = arith.constant 8 : i32
    %38 = vector.broadcast %c8_i32_17 : i32 to vector<8x8xi32>
    %39 = arith.select %37, %19, %38 : vector<8x8xi1>, vector<8x8xi32>
    %cst_18 = arith.constant dense<2147483647> : vector<8xi32>
    %40 = vector.multi_reduction <minsi>, %39, %cst_18 [1] : vector<8x8xi32> to vector<8xi32>
    %41 = vector.shape_cast %40 : vector<8xi32> to vector<8x1xi32>
    %42 = vector.broadcast %41 : vector<8x1xi32> to vector<8x8xi32>
    %43 = arith.cmpi eq, %19, %42 : vector<8x8xi32>
    %44 = arith.ori %31, %43 : vector<8x8xi1>
    %45 = arith.extui %44 : vector<8x8xi1> to vector<8x8xi32>
    %46 = arith.sitofp %45 : vector<8x8xi32> to vector<8x8xf32>
    %47 = arith.index_cast %arg0 : i32 to index
    %48 = memref.load %arg1[%47] : memref<2xf32, #tpu.memory_space<smem>>
    %49 = vector.broadcast %48 : f32 to vector<8x1xf32>
    %c0_19 = arith.constant 0 : index
    %c0_20 = arith.constant 0 : index
    %50 = vector.load %arg7[%c0_19, %c0_20] : memref<8x576xf32, #tpu.memory_space<vmem>>, vector<8x576xf32>
    %cst_21 = arith.constant dense<0.000000e+00> : vector<8x576xf32>
    %51 = tpu.matmul %46, %50, %cst_21 {dimension_numbers = #tpu.dot_dimension_numbers<[1], [0], [0], [1], [0, 0, 1, 1], [], []>} : vector<8x8xf32>, vector<8x576xf32>, vector<8x576xf32> -> vector<8x576xf32>
    %52 = vector.broadcast %49 : vector<8x1xf32> to vector<8x576xf32>
    %53 = arith.mulf %52, %51 : vector<8x576xf32>
    %cst_22 = arith.constant 1.000000e+00 : f32
    %54 = vector.broadcast %cst_22 : f32 to vector<8x1xf32>
    %55 = arith.subf %54, %49 : vector<8x1xf32>
    %c0_23 = arith.constant 0 : index
    %c0_24 = arith.constant 0 : index
    %56 = vector.load %arg8[%c0_23, %c0_24] : memref<1x576xf32, #tpu.memory_space<vmem>>, vector<1x576xf32>
    %57 = vector.broadcast %55 : vector<8x1xf32> to vector<8x576xf32>
    %58 = vector.broadcast %56 : vector<1x576xf32> to vector<8x576xf32>
    %59 = arith.mulf %57, %58 : vector<8x576xf32>
    %60 = arith.addf %53, %59 : vector<8x576xf32>
    %61 = arith.truncf %0 : vector<8x32xf32> to vector<8x32xbf16>
    %c0_25 = arith.constant 0 : index
    %c0_26 = arith.constant 0 : index
    %62 = vector.load %arg9[%c0_25, %c0_26] : memref<32x576xbf16, #tpu.memory_space<vmem>>, vector<32x576xbf16>
    %cst_27 = arith.constant dense<0.000000e+00> : vector<8x576xf32>
    %63 = tpu.matmul %61, %62, %cst_27 {dimension_numbers = #tpu.dot_dimension_numbers<[1], [0], [0], [1], [0, 0, 1, 1], [], []>} : vector<8x32xbf16>, vector<32x576xbf16>, vector<8x576xf32> -> vector<8x576xf32>
    %c0_28 = arith.constant 0 : index
    %c0_29 = arith.constant 0 : index
    %64 = vector.load %arg10[%c0_28, %c0_29] : memref<1x576xf32, #tpu.memory_space<vmem>>, vector<1x576xf32>
    %65 = vector.broadcast %64 : vector<1x576xf32> to vector<8x576xf32>
    %66 = arith.addf %63, %65 : vector<8x576xf32>
    %cst_30 = arith.constant 5.000000e-01 : f32
    %67 = vector.broadcast %cst_30 : f32 to vector<8x576xf32>
    %68 = arith.mulf %67, %66 : vector<8x576xf32>
    %cst_31 = arith.constant 4.471500e-02 : f32
    %69 = vector.broadcast %cst_31 : f32 to vector<8x576xf32>
    %70 = arith.mulf %69, %66 : vector<8x576xf32>
    %71 = arith.mulf %70, %66 : vector<8x576xf32>
    %72 = arith.mulf %71, %66 : vector<8x576xf32>
    %73 = arith.addf %66, %72 : vector<8x576xf32>
    %cst_32 = arith.constant 0.797884583 : f32
    %74 = vector.broadcast %cst_32 : f32 to vector<8x576xf32>
    %75 = arith.mulf %74, %73 : vector<8x576xf32>
    %76 = math.tanh %75 : vector<8x576xf32>
    %cst_33 = arith.constant 1.000000e+00 : f32
    %77 = vector.broadcast %cst_33 : f32 to vector<8x576xf32>
    %78 = arith.addf %77, %76 : vector<8x576xf32>
    %79 = arith.mulf %68, %78 : vector<8x576xf32>
    %80 = arith.mulf %79, %60 : vector<8x576xf32>
    %81 = arith.truncf %80 : vector<8x576xf32> to vector<8x576xbf16>
    %c0_34 = arith.constant 0 : index
    %c0_35 = arith.constant 0 : index
    %82 = vector.load %arg11[%c0_34, %c0_35] : memref<576x32xbf16, #tpu.memory_space<vmem>>, vector<576x32xbf16>
    %cst_36 = arith.constant dense<0.000000e+00> : vector<8x32xf32>
    %83 = tpu.matmul %81, %82, %cst_36 {dimension_numbers = #tpu.dot_dimension_numbers<[1], [0], [0], [1], [0, 0, 1, 1], [], []>} : vector<8x576xbf16>, vector<576x32xbf16>, vector<8x32xf32> -> vector<8x32xf32>
    %c0_37 = arith.constant 0 : index
    %c0_38 = arith.constant 0 : index
    %84 = vector.load %arg12[%c0_37, %c0_38] : memref<9x32xf32, #tpu.memory_space<vmem>>, vector<8x32xf32>
    %cst_39 = arith.constant dense<0.000000e+00> : vector<8x32xf32>
    %85 = tpu.matmul %46, %84, %cst_39 {dimension_numbers = #tpu.dot_dimension_numbers<[1], [0], [0], [1], [0, 0, 1, 1], [], []>} : vector<8x8xf32>, vector<8x32xf32>, vector<8x32xf32> -> vector<8x32xf32>
    %86 = vector.broadcast %49 : vector<8x1xf32> to vector<8x32xf32>
    %87 = arith.mulf %86, %85 : vector<8x32xf32>
    %cst_40 = arith.constant 1.000000e+00 : f32
    %88 = vector.broadcast %cst_40 : f32 to vector<8x1xf32>
    %89 = arith.subf %88, %49 : vector<8x1xf32>
    %c8 = arith.constant 8 : index
    %c0_41 = arith.constant 0 : index
    %90 = vector.load %arg12[%c8, %c0_41] : memref<9x32xf32, #tpu.memory_space<vmem>>, vector<1x32xf32>
    %91 = vector.broadcast %89 : vector<8x1xf32> to vector<8x32xf32>
    %92 = vector.broadcast %90 : vector<1x32xf32> to vector<8x32xf32>
    %93 = arith.mulf %91, %92 : vector<8x32xf32>
    %94 = arith.addf %87, %93 : vector<8x32xf32>
    %95 = arith.addf %83, %94 : vector<8x32xf32>
    %c0_42 = arith.constant 0 : index
    %c0_43 = arith.constant 0 : index
    %96 = vector.load %arg13[%c0_42, %c0_43] : memref<8x32xf32, #tpu.memory_space<vmem>>, vector<8x32xf32>
    tpu.vector_store %arg13[%c0_42, %c0_43], %95 {strides = array<i32>} : memref<8x32xf32, #tpu.memory_space<vmem>>, vector<8x32xf32>,
    return
  }
  func.func @transform_0(%arg0: i32, %arg1: memref<2xf32, #tpu.memory_space<smem>>) -> (i32, i32) {
    %c0_i32 = arith.constant 0 : i32
    %c0_i32_0 = arith.constant 0 : i32
    return %arg0, %c0_i32 : i32, i32
  }
  func.func @transform_1(%arg0: i32, %arg1: memref<2xf32, #tpu.memory_space<smem>>) -> (i32, i32) {
    %c0_i32 = arith.constant 0 : i32
    %c0_i32_0 = arith.constant 0 : i32
    %c0_i32_1 = arith.constant 0 : i32
    return %c0_i32, %c0_i32_0 : i32, i32
  }
  func.func @transform_2(%arg0: i32, %arg1: memref<2xf32, #tpu.memory_space<smem>>) -> (i32, i32) {
    %c0_i32 = arith.constant 0 : i32
    %c0_i32_0 = arith.constant 0 : i32
    %c0_i32_1 = arith.constant 0 : i32
    return %c0_i32, %c0_i32_0 : i32, i32
  }
  func.func @transform_3(%arg0: i32, %arg1: memref<2xf32, #tpu.memory_space<smem>>) -> (i32, i32) {
    %c0_i32 = arith.constant 0 : i32
    %c0_i32_0 = arith.constant 0 : i32
    %c0_i32_1 = arith.constant 0 : i32
    return %c0_i32, %c0_i32_0 : i32, i32
  }
  func.func @transform_4(%arg0: i32, %arg1: memref<2xf32, #tpu.memory_space<smem>>) -> (i32, i32) {
    %c0_i32 = arith.constant 0 : i32
    %c0_i32_0 = arith.constant 0 : i32
    %c0_i32_1 = arith.constant 0 : i32
    return %c0_i32, %c0_i32_0 : i32, i32
  }
  func.func @transform_5(%arg0: i32, %arg1: memref<2xf32, #tpu.memory_space<smem>>) -> (i32, i32) {
    %c0_i32 = arith.constant 0 : i32
    %c0_i32_0 = arith.constant 0 : i32
    %c0_i32_1 = arith.constant 0 : i32
    return %c0_i32, %c0_i32_0 : i32, i32
  }
  func.func @transform_6(%arg0: i32, %arg1: memref<2xf32, #tpu.memory_space<smem>>) -> (i32, i32) {
    %c0_i32 = arith.constant 0 : i32
    %c0_i32_0 = arith.constant 0 : i32
    %c0_i32_1 = arith.constant 0 : i32
    return %c0_i32, %c0_i32_0 : i32, i32
  }
  func.func @transform_7(%arg0: i32, %arg1: memref<2xf32, #tpu.memory_space<smem>>) -> (i32, i32) {
    %c0_i32 = arith.constant 0 : i32
    %c0_i32_0 = arith.constant 0 : i32
    %c0_i32_1 = arith.constant 0 : i32
    return %c0_i32, %c0_i32_0 : i32, i32
  }
  func.func @transform_8(%arg0: i32, %arg1: memref<2xf32, #tpu.memory_space<smem>>) -> (i32, i32) {
    %c0_i32 = arith.constant 0 : i32
    %c0_i32_0 = arith.constant 0 : i32
    %c0_i32_1 = arith.constant 0 : i32
    return %c0_i32, %c0_i32_0 : i32, i32
  }
  func.func @transform_9(%arg0: i32, %arg1: memref<2xf32, #tpu.memory_space<smem>>) -> (i32, i32) {
    %c0_i32 = arith.constant 0 : i32
    %c0_i32_0 = arith.constant 0 : i32
    %c0_i32_1 = arith.constant 0 : i32
    return %c0_i32, %c0_i32_0 : i32, i32
  }
  func.func @transform_10(%arg0: i32, %arg1: memref<2xf32, #tpu.memory_space<smem>>) -> (i32, i32) {
    %c0_i32 = arith.constant 0 : i32
    %c0_i32_0 = arith.constant 0 : i32
    %c0_i32_1 = arith.constant 0 : i32
    return %c0_i32, %c0_i32_0 : i32, i32
  }
  func.func @transform_11(%arg0: i32, %arg1: memref<2xf32, #tpu.memory_space<smem>>) -> (i32, i32) {
    %c0_i32 = arith.constant 0 : i32
    %c0_i32_0 = arith.constant 0 : i32
    return %arg0, %c0_i32 : i32, i32
  }
}

</mosaic_0001>

<bundles_post_ra>
// kernel: deepseek_moe_forward.1
= control target key start
LH: loop header
LB: loop body
LE: loop exit
PB: predicated region body
PF: predicated region fallthrough
CT: control target
= control target key end

     0   :  { %s3909_s0 = inlined_call_operand.vmem [shape: f32[2], index: 0, kind: input, shape index: {}]   ;;  %s3910_s1 = inlined_call_operand.vmem [shape: f32[16,32], index: 1, kind: input, shape index: {}]   ;;  %s3911_s2 = inlined_call_operand.vmem [shape: f32[32,64], index: 2, kind: input, shape index: {}]   ;;  %s3912_s3 = inlined_call_operand.vmem [shape: f32[1,64], index: 3, kind: input, shape index: {}]   ;;  %s3913_s4 = inlined_call_operand.vmem [shape: f32[64,8], index: 4, kind: input, shape index: {}]   ;;  %s3914_s5 = inlined_call_operand.vmem [shape: f32[1,8], index: 5, kind: input, shape index: {}]   ;;  %s3915_s6 = inlined_call_operand.vmem [shape: f32[8,576], index: 6, kind: input, shape index: {}]   ;;  %s3916_s7 = inlined_call_operand.vmem [shape: f32[1,576], index: 7, kind: input, shape index: {}]   ;;  %s3917_s8 = inlined_call_operand.vmem [shape: bf16[32,576], index: 8, kind: input, shape index: {}]   ;;  %s3918_s9 = inlined_call_operand.vmem [shape: f32[1,576], index: 9, kind: input, shape index: {}]   ;;  %s3919_s10 = inlined_call_operand.vmem [shape: bf16[576,32], index: 10, kind: input, shape index: {}]   ;;  %s3920_s11 = inlined_call_operand.vmem [shape: f32[9,32], index: 11, kind: input, shape index: {}]   ;;  %s3921_s12 = inlined_call_operand.hbm [shape: f32[16,32], index: 12, kind: output, shape index: {}]  }
   0x1   :  { %s17_s23 = sshll.u32 %s3909_s0, 4  ;;  %s18_s23 = int_to_ptr.vmem [resolvable:$true] %s17_s23 }
   0x2   :  { %s3256_s24 = scalar_lea.vmem %s18_s23, 16  ;;  %p3261_p1 = scmp.lt.s32.totalorder %s18_s23, %s18_s23 }
   0x3   :  { %p3257_p0 = scmp.ne.s32.totalorder %s18_s23, %s3256_s24  ;;  %p3262_p2 = scmp.lt.s32.totalorder %s3256_s24, %s3256_s24 }
   0x5   :  { %p3263_p3 = por %p3262_p2, %p3261_p1 }
   0x7   :  { %p3264_p4 = pnand %p3263_p3, %p3257_p0 }
   0x9   :  { %3267 = shalt.err (!%p3264_p4)  }
   0xa   :  { %s3334_s25 = smov [#allocation3]  }
   0xb   :  { %20 = dma.vmem_to_smem %s18_s23, 16, %s3334_s25, [#allocation2] }
   0xc   :  { %3312 = dma.done.wait [#allocation2], 16 }
   0xd   :  { %3313 = vsyncadd [#allocation2], 4294967280 }
   0xe   :  { %22 = sfence }
   0xf   :  { %23 = vsyncpa [#allocation5], 0 }
  0x10   :  { %25 = vsyncpa [#allocation5 + $0x1], 0  ;;  %s3408_s26 = smov 0   ;;  %s3410_s27 = smov 0  }
  0x11   :  { %s3412_s0 = smov 0   ;;  %s3414_s28 = smov 0  }
  0x12 LB: > { %s3429_s29 = sadd.s32 4294967295, %s3332_s28   ;;  %s2602_s30 = sadd.s32 4294967294, %s3332_s28   ;;  %s3332_s28 = sphi %s3414_s28, %s3927_s28   ;;  %s3328_s0 = sphi %s3412_s0, %s3926_s0   ;;  %s3324_s27 = sphi %s3410_s27, %s3925_s27   ;;  %s3320_s26 = sphi %s3408_s26, %s3924_s26  }
  0x13   : > { %s3433_s13 = sadd.s32 1, %s3332_s28   ;;  %s274_s14 = sadd.s32 1, %s3328_s0 }
  0x14   : > { %s271_s15 = ssub.s32 %s3332_s28, %s3433_s13  ;;  %p284_p5 = scmp.ne.s32.totalorder %s3328_s0, %s3324_s27 }
  0x15   : > { %p272_p6 = scmp.eq.s32.totalorder %s271_s15, 0  ;;  %p285_p7 = scmp.eq.s32.totalorder %s3429_s29, 1 }
  0x16   : > { %p290_p8 = scmp.ne.s32.totalorder %s3324_s27, %s3320_s26  ;;  %p291_p9 = scmp.eq.s32.totalorder %s2602_s30, 1 }
  0x17   : > { %s3444_s16 = scalar_select %p272_p6, %s3328_s0, %s274_s14  }
  0x18   : > { %p3446_p10 = por %p285_p7, %p284_p5  ;;  %p3450_p11 = por %p291_p9, %p290_p8 }
  0x19   : > { %p2605_p12 = scmp.ge.s32.totalorder %s3332_s28, 1  ;;  %p346_p13 = scmp.lt.s32.totalorder %s3332_s28, 3 }
  0x1b   : > { %p347_p0 = pnand %p2605_p12, %p346_p13 }
  0x1c   : > { %v391_v0 = vld [vmem:[%s3911_s2] sm:$0xff] (!%p347_p0)  ;;  %v392_v1 = vld [vmem:[%s3911_s2 + $0x8] sm:$0xff] (!%p347_p0)  ;;  %v393_v2 = vld [vmem:[%s3911_s2 + $0x10] sm:$0xff] (!%p347_p0)  ;;  %v3335_v3 = vmov (!%p347_p0), 0.0|0.0   ;;  %vm3336_vm0 = vmmov (!%p347_p0), 0   ;;  %v3337_v8 = vmov (!%p347_p0), 0.0  }
  0x1d   : > { %350 = sbr.rel (%p347_p0) target bundleno = 2018 (0x7e2), region = 64  ;;  %3020 = vmatprep.subr.bf16.mxu0 (!%p347_p0), %v3335_v3  ;;  %v407_v4 = vand.u32 (!%p347_p0), 4294901760, %v391_v0  ;;  %v410_v5 = vand.u32 (!%p347_p0), 4294901760, %v392_v1  ;;  %v394_v6 = vld [vmem:[%s3911_s2 + $0x18] sm:$0xff] (!%p347_p0)  ;;  %v413_v7 = vand.u32 (!%p347_p0), 4294901760, %v393_v2  ;;  %2818 = vmatprep.mubr.msk.f32.mxu0 (!%p347_p0), %vm3336_vm0, %v3337_v8  ;;  %p385_p1 = scmp.lt.s32.totalorder (!%p347_p0), %s3429_s29, 1 }
  0x1e   : > { %v416_v9 = vand.u32 (!%p347_p0), 4294901760, %v394_v6  ;;  %3056 = vmatprep.subr.bf16.mxu1 (!%p347_p0), %v3335_v3  ;;  %2892 = vmatprep.mubr.msk.f32.mxu1 (!%p347_p0), %vm3336_vm0, %v3337_v8  ;;  %vm402_vm1 = vcmask (!%p347_p0), 261120   ;;  %v896_v41 = vld [vmem:[%s3913_s4] sm:$0xff] (!%p347_p0)  ;;  %v897_v42 = vld [vmem:[%s3913_s4 + $0x8] sm:$0xff] (!%p347_p0)  ;;  %v898_v46 = vld [vmem:[%s3913_s4 + $0x10] sm:$0xff] (!%p347_p0)  ;;  %vm911_vm2 = vcmask (!%p347_p0), 523264  }
  0x1f   : > { %v3475_v10 = vpack.c.bf16 (!%p347_p0), %v410_v5, %v407_v4  ;;  %v487_v11 = vsub.f32 (!%p347_p0), %v391_v0, %v407_v4  ;;  %v494_v12 = vsub.f32 (!%p347_p0), %v392_v1, %v410_v5  ;;  %v501_v13 = vsub.f32 (!%p347_p0), %v393_v2, %v413_v7  ;;  %v899_v47 = vld [vmem:[%s3913_s4 + $0x18] sm:$0xff] (!%p347_p0)  ;;  %v900_v51 = vld [vmem:[%s3913_s4 + $0x20] sm:$0xff] (!%p347_p0)  ;;  %v901_v52 = vld [vmem:[%s3913_s4 + $0x28] sm:$0xff] (!%p347_p0)  ;;  %s382_s23 = sand.u32 (!%p347_p0), 1, %s3324_s27   ;;  %s2667_s25 = sshll.u32 (!%p347_p0), %s3429_s29, 7 }
  0x20   : > { %v508_v14 = vsub.f32 (!%p347_p0), %v394_v6, %v416_v9  ;;  %v3024_v15 = vpack.c.bf16 (!%p347_p0), %v416_v9, %v413_v7  ;;  %v916_v43 = vand.u32 (!%p347_p0), 4294901760, %v896_v41  ;;  %v919_v44 = vand.u32 (!%p347_p0), 4294901760, %v897_v42  ;;  %v902_v58 = vld [vmem:[%s3913_s4 + $0x30] sm:$0xff] (!%p347_p0)  ;;  %v903_v59 = vld [vmem:[%s3913_s4 + $0x38] sm:$0xff] (!%p347_p0)  ;;  %s2606_s24 = sshll.u32 (!%p347_p0), %s382_s23, 3  ;;  %s3866_s20 = scalar_lea.hbm (!%p347_p0), %s3921_s12, %s2667_s25 }
  0x21   : > { %3022 = vmatpush3.bf16.msra.mxu0 (!%p347_p0), %v3475_v10  ;;  %v488_v16 = vand.u32 (!%p347_p0), 4294901760, %v487_v11  ;;  %v495_v17 = vand.u32 (!%p347_p0), 4294901760, %v494_v12  ;;  %v502_v18 = vand.u32 (!%p347_p0), 4294901760, %v501_v13  ;;  %v3033_v37 = vpack.c.bf16 (!%p347_p0), %v494_v12, %v487_v11  ;;  %s384_s30 = scalar_lea.vmem (!%p347_p0), [#allocation4], %s2606_s24  ;;  %s3339_s22 = smov (!%p347_p0), [#allocation4]  }
  0x22   : > { %3023 = vmatprep.subr.bf16.mxu0 (!%p347_p0), %v3335_v3  ;;  %v509_v19 = vand.u32 (!%p347_p0), 4294901760, %v508_v14  ;;  %v3036_v38 = vpack.c.bf16 (!%p347_p0), %v508_v14, %v501_v13  ;;  %v3516_v45 = vpack.c.bf16 (!%p347_p0), %v919_v44, %v916_v43  ;;  %v922_v48 = vand.u32 (!%p347_p0), 4294901760, %v898_v46  ;;  %s3272_s24 = sshll.u32 (!%p347_p0), %s3339_s22, 4  ;;  %s3273_s24 = int_to_ptr.vmem [resolvable:$false] %s3272_s24 }
  0x23   : > { %v489_v21 = vsub.f32 (!%p347_p0), %v487_v11, %v488_v16  ;;  %v496_v22 = vsub.f32 (!%p347_p0), %v494_v12, %v495_v17  ;;  %v503_v23 = vsub.f32 (!%p347_p0), %v501_v13, %v502_v18  ;;  %v3045_v39 = vpack.c.bf16 (!%p347_p0), %v495_v17, %v488_v16  ;;  %s3274_s25 = scalar_lea.vmem (!%p347_p0), %s3273_s24, 256 }
  0x24   : > { %s386_s14 = scalar_select %p385_p1, %s3429_s29, 1  ;;  %v510_v27 = vsub.f32 %v508_v14, %v509_v19  ;;  %v3048_v40 = vpack.c.bf16 %v509_v19, %v502_v18  ;;  %3058 = vmatpush3.bf16.msra.mxu1 %v3516_v45  ;;  %v925_v49 = vand.u32 4294901760, %v899_v47  ;;  %v928_v53 = vand.u32 4294901760, %v900_v51 }
  0x25   : > { %3025 = vmatpush3.bf16.msra.mxu0 %v3024_v15  ;;  %v490_v26 = vand.u32 4294901760, %v489_v21  ;;  %v497_v28 = vand.u32 4294901760, %v496_v22  ;;  %v504_v29 = vand.u32 4294901760, %v503_v23  ;;  %3059 = vmatprep.subr.bf16.mxu1 %v3335_v3  ;;  %v931_v54 = vand.u32 4294901760, %v901_v52 }
  0x26   : > { %s2607_s15 = sshll.u32 %s386_s14, 3  ;;  %3026 = vmatprep.subr.bf16.mxu0 %v3335_v3  ;;  %v511_v32 = vand.u32 4294901760, %v510_v27  ;;  %v3526_v50 = vpack.c.bf16 %v925_v49, %v922_v48  ;;  %v3536_v55 = vsub.f32 %v896_v41, %v916_v43  ;;  %v3538_v56 = vsub.f32 %v897_v42, %v919_v44  ;;  %v2608_v44 = vld [vmem:[%s3912_s3] ss:$0 sm:$0xff]  ;;  %s2543_s14 = sshll.u32 %s384_s30, 4  ;;  %s3868_s14 = int_to_ptr.vmem [resolvable:$true] %s2543_s14 }
  0x27   : > { %s388_s21 = scalar_lea.vmem %s3910_s1, %s2607_s15  ;;  %v3027_v34 = vpack.c.bf16 %v497_v28, %v490_v26  ;;  %v3540_v57 = vpack.c.bf16 %v931_v54, %v928_v53  ;;  %v3548_v60 = vsub.f32 %v898_v46, %v922_v48  ;;  %v3550_v61 = vsub.f32 %v899_v47, %v925_v49  ;;  %s1501_s15 = sld [smem:[#allocation3 + %s3429_s29]] }
  0x28   : > { %v3483_v20 = vld [vmem:[%s388_s21] sm:$0xff]  ;;  %v3030_v36 = vpack.c.bf16 %v511_v32, %v504_v29  ;;  %3061 = vmatpush3.bf16.msra.mxu1 %v3526_v50  ;;  %v3553_v62 = vsub.f32 %v900_v51, %v928_v53  ;;  %v3555_v63 = vsub.f32 %v901_v52, %v931_v54  ;;  %v934_v0 = vand.u32 4294901760, %v902_v58  ;;  %s2530_s29 = scalar_lea.sflag [#allocation5], %s382_s23  ;;  %s3268_s21 = scalar_lea.vmem %s3868_s14, 128 }
  0x29   : > { %v404_v24 = vsel %vm402_vm1, %v3483_v20, 0  ;;  %3062 = vmatprep.subr.bf16.mxu1 %v3335_v3  ;;  %v937_v1 = vand.u32 4294901760, %v903_v59  ;;  %v1001_v2 = vand.u32 4294901760, %v3536_v55  ;;  %v1008_v4 = vand.u32 4294901760, %v3538_v56  ;;  %p3269_p2 = scmp.ne.s32.totalorder %s3868_s14, %s3268_s21  ;;  %p3275_p5 = scmp.lt.s32.totalorder %s3868_s14, %s3273_s24 }
  0x2a   : > { %v475_v25 = vand.u32 4294901760, %v404_v24  ;;  %v3562_v6 = vsub.f32 %v902_v58, %v934_v0  ;;  %v1015_v12 = vand.u32 4294901760, %v3548_v60  ;;  %v1022_v13 = vand.u32 4294901760, %v3550_v61  ;;  %p3276_p6 = scmp.lt.s32.totalorder %s3274_s25, %s3268_s21 }
  0x2b   : > { %v3560_v5 = vpack.c.bf16 %v937_v1, %v934_v0  ;;  %v3564_v7 = vsub.f32 %v903_v59, %v937_v1  ;;  %v1002_v9 = vsub.f32 %v3536_v55, %v1001_v2  ;;  %v1029_v21 = vand.u32 4294901760, %v3553_v62  ;;  %p3270_p3 = pnand %p3269_p2, %p3446_p10 }
  0x2c   : > { %v476_v30 = vsub.f32 %v404_v24, %v475_v25  ;;  %3064 = vmatpush3.bf16.msra.mxu1 %v3540_v57  ;;  %v1023_v16 = vsub.f32 %v3550_v61, %v1022_v13  ;;  %v1036_v22 = vand.u32 4294901760, %v3555_v63  ;;  %v1043_v28 = vand.u32 4294901760, %v3562_v6  ;;  %p3277_p7 = por %p3276_p6, %p3275_p5 }
  0x2d   : > { %3065 = vmatprep.subr.bf16.mxu1 %v3335_v3  ;;  %v1003_v11 = vand.u32 4294901760, %v1002_v9  ;;  %v1030_v24 = vsub.f32 %v3553_v62, %v1029_v21  ;;  %v1050_v29 = vand.u32 4294901760, %v3564_v7  ;;  %v3108_v41 = vpack.c.bf16 %v1022_v13, %v1015_v12  ;;  %p3271_p4 = pneg %p3270_p3 }
  0x2e   : > { %v477_v31 = vand.u32 4294901760, %v476_v30  ;;  %v1024_v19 = vand.u32 4294901760, %v1023_v16  ;;  %v3111_v42 = vpack.c.bf16 %v1036_v22, %v1029_v21  ;;  %vm1454_vm3 = vcmask 64512  }
  0x2f   : > { %v1031_v26 = vand.u32 4294901760, %v1030_v24  ;;  %v1051_v32 = vsub.f32 %v3564_v7, %v1050_v29  ;;  %v3114_v43 = vpack.c.bf16 %v1050_v29, %v1043_v28  ;;  %v1504_v29 = vld [vmem:[%s3915_s6 + $0x8] sm:$0xff]  ;;  %p3278_p8 = pnand %p3277_p7, %p3271_p4 }
  0x30   : > { %v478_v33 = vsub.f32 %v476_v30, %v477_v31  ;;  %3067 = vmatpush3.bf16.msra.mxu1 %v3560_v5 }
  0x31   : > { %3068 = vmatprep.subr.bf16.mxu1 %v3335_v3 }
  0x32   : > { %v479_v35 = vand.u32 4294901760, %v478_v33 }
  0x34   : > { %2819 = vmatmul.mubr.f32.vlgmr.msra.gmra.mrb[0].mxu0 %v479_v35 }
  0x35   : > { %3028 = vmatpush3.bf16.msra.mxu0 %v3027_v34  ;;  %2829 = vmatprep.mubr.msk.f32.mxu0 %vm3336_vm0, %v3337_v8  ;;  %v1052_v34 = vand.u32 4294901760, %v1051_v32  ;;  %v2110_v32 = vld [vmem:[%s3920_s11] sm:$0xff] }
  0x36   : > { %3029 = vmatprep.subr.bf16.mxu0 %v3335_v3 }
  0x39   : > { %3031 = vmatpush3.bf16.msra.mxu0 %v3030_v36  ;;  %v3081_v36 = vpack.c.bf16 %v3538_v56, %v3536_v55 }
  0x3a   : > { %3032 = vmatprep.subr.bf16.mxu0 %v3335_v3 }
  0x3c   : > { %2830 = vmatmul.mubr.f32.vlgmr.msra.gmra.mrb[0].mxu0 %v475_v25 }
  0x3d   : > { %3034 = vmatpush3.bf16.msra.mxu0 %v3033_v37  ;;  %2840 = vmatprep.mubr.msk.f32.mxu0 %vm3336_vm0, %v3337_v8  ;;  %v3084_v37 = vpack.c.bf16 %v3550_v61, %v3548_v60 }
  0x3e   : > { %3035 = vmatprep.subr.bf16.mxu0 %v3335_v3 }
  0x41   : > { %3037 = vmatpush3.bf16.msra.mxu0 %v3036_v38  ;;  %v3087_v38 = vpack.c.bf16 %v3555_v63, %v3553_v62 }
  0x42   : > { %3038 = vmatprep.subr.bf16.mxu0 %v3335_v3 }
  0x44   : > { %2841 = vmatmul.mubr.f32.vlgmr.msra.gmra.mrb[0].mxu0 %v476_v30 }
  0x45   : > { %3040 = vmatpush3.bf16.msra.mxu0 %v3475_v10  ;;  %2851 = vmatprep.mubr.msk.f32.mxu0 %vm3336_vm0, %v3337_v8 }
  0x46   : > { %3041 = vmatprep.subr.bf16.mxu0 %v3335_v3 }
  0x49   : > { %3043 = vmatpush3.bf16.msra.mxu0 %v3024_v15 }
  0x4a   : > { %3044 = vmatprep.subr.bf16.mxu0 %v3335_v3 }
  0x4c   : > { %2852 = vmatmul.mubr.f32.vlgmr.msra.gmra.mrb[0].mxu0 %v477_v31  ;;  %v1044_v31 = vsub.f32 %v3562_v6, %v1043_v28 }
  0x4d   : > { %3046 = vmatpush3.bf16.msra.mxu0 %v3045_v39  ;;  %2862 = vmatprep.mubr.msk.f32.mxu0 %vm3336_vm0, %v3337_v8  ;;  %v3090_v39 = vpack.c.bf16 %v3564_v7, %v3562_v6 }
  0x4e   : > { %3047 = vmatprep.subr.bf16.mxu0 %v3335_v3  ;;  %v1045_v33 = vand.u32 4294901760, %v1044_v31  ;;  %v1506_v31 = vld [vmem:[%s3915_s6 + $0x18] sm:$0xff] }
  0x50   : > { %v3078_v35 = vpack.c.bf16 %v1052_v34, %v1045_v33 }
  0x51   : > { %3049 = vmatpush3.bf16.msra.mxu0 %v3048_v40  ;;  %v3105_v40 = vpack.c.bf16 %v1008_v4, %v1001_v2 }
  0x52   : > { %3050 = vmatprep.subr.bf16.mxu0 %v3335_v3 }
  0x54   : > { %2863 = vmatmul.mubr.f32.vlgmr.msra.gmra.mrb[0].mxu0 %v475_v25 }
  0x55   : > { %3052 = vmatpush3.bf16.msra.mxu0 %v3475_v10  ;;  %2873 = vmatprep.mubr.msk.f32.mxu0 %vm3336_vm0, %v3337_v8  ;;  %v1009_v10 = vsub.f32 %v3538_v56, %v1008_v4 }
  0x56   : > { %3053 = vmatprep.subr.bf16.mxu0 %v3335_v3 }
  0x57   : > { %v1010_v14 = vand.u32 4294901760, %v1009_v10 }
  0x59   : > { %3055 = vmatpush3.bf16.msra.mxu0 %v3024_v15  ;;  %v1016_v15 = vsub.f32 %v3548_v60, %v1015_v12  ;;  %v3069_v17 = vpack.c.bf16 %v1010_v14, %v1003_v11 }
  0x5a   : > { %1511 = vmatprep.subr.mxu0 %v1504_v29 }
  0x5b   : > { %v1017_v18 = vand.u32 4294901760, %v1016_v15 }
  0x5c   : > { %2874 = vmatmul.mubr.f32.vlgmr.msra.gmra.mrb[0].mxu0 %v475_v25  ;;  %v1037_v25 = vsub.f32 %v3555_v63, %v1036_v22 }
  0x5d   : > { %1575 = vmatprep.mubr.f32.mxu0 %v3337_v8  ;;  %v3072_v23 = vpack.c.bf16 %v1024_v19, %v1017_v18 }
  0x5e   : > { %v1038_v27 = vand.u32 4294901760, %v1037_v25 }
  0x60   : > { %v3075_v30 = vpack.c.bf16 %v1038_v27, %v1031_v26 }
 0x12f   : > { %v887_v46 = vpop.f32.mrb[0].mxu0 }
 0x130   : > { %v3128_v47 = vadd.f32 %v2608_v44, %v887_v46  ;;  %v2875_v48 = vpop.f32.mrb[1].mxu0  ;;  %v3197_v44 = vld [vmem:[%s3917_s8 + $0x28] ss:$20 sps:$4 sm:$0xff]   ;;  %v3338_v46 = vmov 0  }
 0x131   : > { %v1766_v48 = vpack.c.bf16 %v3483_v20, %v3483_v20  ;;  %v3206_v20 = vld [vmem:[%s3917_s8 + $0x10] ss:$20 sps:$4 sm:$0xff]  }
 0x132   : > { %v892_v49 = vmul.f32 0.70710677, %v3128_v47  ;;  %v891_v52 = vmul.f32 0.5, %v3128_v47  ;;  %v3202_v47 = vld [vmem:[%s3917_s8 + $0xc] ss:$20 sps:$4 sm:$0xff]  }
 0x134   : > { %3244 = verf.f32 %v892_v49  ;;  %v3200_v49 = vld [vmem:[%s3917_s8 + $0x8] ss:$20 sps:$4 sm:$0xff]  }
 0x13e   : > { %v3245_v51 = vpop.eup %3244 }
 0x13f   : > { %v894_v53 = vadd.f32 1.0, %v3245_v51  ;;  %v3205_v51 = vld [vmem:[%s3917_s8 + $0x34] ss:$20 sps:$4 sm:$0xff]  }
 0x141   : > { %v895_v54 = vmul.f32 %v894_v53, %v891_v52  ;;  %v3203_v52 = vld [vmem:[%s3917_s8 + $0x30] ss:$20 sps:$4 sm:$0xff]   ;;  %v3207_v53 = vld [vmem:[%s3917_s8 + $0x38] ss:$20 sps:$4 sm:$0xff]  }
 0x143   : > { %v913_v55 = vsel %vm911_vm2, %v895_v54, 0  ;;  %v3208_v54 = vld [vmem:[%s3919_s10 + $0x40] sm:$0xff]  }
 0x144   : > { %v988_v56 = vand.u32 4294901760, %v913_v55 }
 0x146   : > { %v989_v58 = vsub.f32 %v913_v55, %v988_v56  ;;  %v3209_v55 = vld [vmem:[%s3919_s10] sm:$0xff]  }
 0x148   : > { %v990_v59 = vand.u32 4294901760, %v989_v58 }
 0x14a   : > { %v991_v60 = vsub.f32 %v989_v58, %v990_v59 }
 0x14c   : > { %v992_v61 = vand.u32 4294901760, %v991_v60  ;;  %v3213_v60 = vld [vmem:[%s3919_s10 + $0x10] sm:$0xff]  }
 0x14e   : > { %2893 = vmatmul.mubr.f32.vlgmr.msra.gmra.mrb[0].mxu1 %v992_v61  ;;  %v3214_v61 = vld [vmem:[%s3919_s10 + $0xc0] sm:$0xff]  }
 0x14f   : > { %3070 = vmatpush3.bf16.msra.mxu1 %v3069_v17  ;;  %2911 = vmatprep.mubr.msk.f32.mxu1 %vm3336_vm0, %v3337_v8 }
 0x150   : > { %3071 = vmatprep.subr.bf16.mxu1 %v3335_v3 }
 0x153   : > { %3073 = vmatpush3.bf16.msra.mxu1 %v3072_v23 }
 0x154   : > { %3074 = vmatprep.subr.bf16.mxu1 %v3335_v3 }
 0x157   : > { %3076 = vmatpush3.bf16.msra.mxu1 %v3075_v30  ;;  %v1503_v30 = vld [vmem:[%s3915_s6] sm:$0xff] }
 0x158   : > { %3077 = vmatprep.subr.bf16.mxu1 %v3335_v3  ;;  %1512 = vmatpush1.msra.mxu0 %v1503_v30 }
 0x159   : > { %1582 = vmatprep.subr.mxu0 %v1506_v31  ;;  %v2628_v31 = vld [vmem:[%s3920_s11 + $0x8] ss:$0 sm:$0xff] }
 0x15b   : > { %3079 = vmatpush3.bf16.msra.mxu1 %v3078_v35 }
 0x15c   : > { %3080 = vmatprep.subr.bf16.mxu1 %v3335_v3 }
 0x15e   : > { %2912 = vmatmul.mubr.f32.vlgmr.msra.gmra.mrb[0].mxu1 %v988_v56 }
 0x15f   : > { %3082 = vmatpush3.bf16.msra.mxu1 %v3081_v36  ;;  %2930 = vmatprep.mubr.msk.f32.mxu1 %vm3336_vm0, %v3337_v8 }
 0x160   : > { %3083 = vmatprep.subr.bf16.mxu1 %v3335_v3 }
 0x163   : > { %3085 = vmatpush3.bf16.msra.mxu1 %v3084_v37 }
 0x164   : > { %3086 = vmatprep.subr.bf16.mxu1 %v3335_v3 }
 0x167   : > { %3088 = vmatpush3.bf16.msra.mxu1 %v3087_v38  ;;  %v1505_v38 = vld [vmem:[%s3915_s6 + $0x10] sm:$0xff] }
 0x168   : > { %3089 = vmatprep.subr.bf16.mxu1 %v3335_v3 }
 0x16b   : > { %3091 = vmatpush3.bf16.msra.mxu1 %v3090_v39 }
 0x16c   : > { %3092 = vmatprep.subr.bf16.mxu1 %v3335_v3 }
 0x16e   : > { %2931 = vmatmul.mubr.f32.vlgmr.msra.gmra.mrb[0].mxu1 %v989_v58  ;;  %v3211_v58 = vld [vmem:[%s3919_s10 + $0x8] sm:$0xff]  }
 0x16f   : > { %3094 = vmatpush3.bf16.msra.mxu1 %v3516_v45  ;;  %2949 = vmatprep.mubr.msk.f32.mxu1 %vm3336_vm0, %v3337_v8 }
 0x170   : > { %3095 = vmatprep.subr.bf16.mxu1 %v3335_v3 }
 0x173   : > { %3097 = vmatpush3.bf16.msra.mxu1 %v3526_v50 }
 0x174   : > { %3098 = vmatprep.subr.bf16.mxu1 %v3335_v3 }
 0x177   : > { %3100 = vmatpush3.bf16.msra.mxu1 %v3540_v57 }
 0x178   : > { %3101 = vmatprep.subr.bf16.mxu1 %v3335_v3 }
 0x17b   : > { %3103 = vmatpush3.bf16.msra.mxu1 %v3560_v5 }
 0x17c   : > { %3104 = vmatprep.subr.bf16.mxu1 %v3335_v3 }
 0x17e   : > { %2950 = vmatmul.mubr.f32.vlgmr.msra.gmra.mrb[0].mxu1 %v990_v59  ;;  %v3212_v59 = vld [vmem:[%s3919_s10 + $0x50] sm:$0xff]  }
 0x17f   : > { %3106 = vmatpush3.bf16.msra.mxu1 %v3105_v40  ;;  %2968 = vmatprep.mubr.msk.f32.mxu1 %vm3336_vm0, %v3337_v8  ;;  %v1507_v40 = vld [vmem:[%s3915_s6 + $0x20] sm:$0xff] }
 0x180   : > { %3107 = vmatprep.subr.bf16.mxu1 %v3335_v3 }
 0x183   : > { %3109 = vmatpush3.bf16.msra.mxu1 %v3108_v41  ;;  %v3196_v41 = vld [vmem:[%s3917_s8 + $0x4] ss:$20 sps:$4 sm:$0xff]  }
 0x184   : > { %3110 = vmatprep.subr.bf16.mxu1 %v3335_v3 }
 0x187   : > { %3112 = vmatpush3.bf16.msra.mxu1 %v3111_v42  ;;  %v3194_v42 = vld [vmem:[%s3917_s8] ss:$20 sps:$4 sm:$0xff]  }
 0x188   : > { %3113 = vmatprep.subr.bf16.mxu1 %v3335_v3 }
 0x18b   : > { %3115 = vmatpush3.bf16.msra.mxu1 %v3114_v43  ;;  %v3199_v43 = vld [vmem:[%s3917_s8 + $0x2c] ss:$20 sps:$4 sm:$0xff]  }
 0x18c   : > { %3116 = vmatprep.subr.bf16.mxu1 %v3335_v3 }
 0x18e   : > { %2969 = vmatmul.mubr.f32.vlgmr.msra.gmra.mrb[0].mxu1 %v988_v56 }
 0x18f   : > { %3118 = vmatpush3.bf16.msra.mxu1 %v3516_v45  ;;  %2987 = vmatprep.mubr.msk.f32.mxu1 %vm3336_vm0, %v3337_v8  ;;  %v2609_v45 = vld [vmem:[%s3914_s5] ss:$0 sm:$0xff] }
 0x190   : > { %3119 = vmatprep.subr.bf16.mxu1 %v3335_v3 }
 0x193   : > { %3121 = vmatpush3.bf16.msra.mxu1 %v3526_v50 }
 0x194   : > { %3122 = vmatprep.subr.bf16.mxu1 %v3335_v3 }
 0x197   : > { %3124 = vmatpush3.bf16.msra.mxu1 %v3540_v57 }
 0x198   : > { %3125 = vmatprep.subr.bf16.mxu1 %v3335_v3  ;;  %v1452_v3 = vlaneseq }
 0x19a   : > { %v1453_v0 = vand.u32 127, %v1452_v3 }
 0x19b   : > { %3127 = vmatpush3.bf16.msra.mxu1 %v3560_v5 }
 0x19c   : > { %3003 = vmatprep.subr.mxu1 %v3337_v8 }
 0x19e   : > { %2988 = vmatmul.mubr.f32.vlgmr.msra.gmra.mrb[0].mxu1 %v988_v56  ;;  %v3210_v56 = vld [vmem:[%s3919_s10 + $0x48] sm:$0xff]  }
 0x19f   : > { %3005 = vmatprep.mubr.msk.f32.mxu1 %vm3336_vm0, %v3337_v8  ;;  %3004 = vmatpush3.msra.mxu1 %v2110_v32 }
 0x1a0   : > { %2783 = vmatprep.subr.bf16.mxu1 %v3214_v61 }
 0x271   : > { %v1448_v62 = vpop.f32.mrb[0].mxu1 }
 0x272   : > { %v3129_v50 = vadd.f32 %v2609_v45, %v1448_v62  ;;  %v2989_v63 = vpop.f32.mrb[1].mxu1  ;;  %v3215_v45 = vld [vmem:[%s3919_s10 + $0x80] sm:$0xff]   ;;  %v3216_v62 = vld [vmem:[%s3919_s10 + $0x58] sm:$0xff]  }
 0x273   : > { %v3218_v63 = vld [vmem:[%s3919_s10 + $0xc8] sm:$0xff]  }
 0x274   : > { %v1455_v57 = vsel %vm1454_vm3, %v3129_v50, -inf }
 0x275   : > { %1456 = vmax.xlane.f32.xlu0 %v1455_v57  ;;  %v3219_v57 = vld [vmem:[%s3919_s10 + $0x88] sm:$0xff]  }
 0x302   : > { %v1457_v1 = vpop.xlane.xlu0 %1456 }
 0x303   : > { %vm1458_vm4 = vcmp.eq.f32.partialorder %v3129_v50, %v1457_v1  ;;  %v3221_v1 = vld [vmem:[%s3919_s10 + $0x20] sm:$0xff]  }
 0x304   : > { %v1459_v2 = vsel %vm1458_vm4, %v1453_v0, 8 }
 0x305   : > { %v1460_v4 = vsel %vm1454_vm3, %v1459_v2, 2147483647  ;;  %v3222_v2 = vld [vmem:[%s3919_s10 + $0xd0] sm:$0xff]  }
 0x306   : > { %v1462_v5 = vshra.s32 %v1460_v4, 16  ;;  %v1461_v7 = vand.u32 65535, %v1460_v4  ;;  %v3223_v4 = vld [vmem:[%s3919_s10 + $0x90] sm:$0xff]  }
 0x308   : > { %v1464_v6 = vcvt.s32.f32 %v1462_v5  ;;  %v1463_v10 = vcvt.s32.f32 %v1461_v7  ;;  %v3224_v5 = vld [vmem:[%s3919_s10 + $0x68] sm:$0xff]   ;;  %v3226_v7 = vld [vmem:[%s3919_s10 + $0xd8] sm:$0xff]  }
 0x30a   : > { %1465 = vmin.xlane.f32.xlu0 %v1464_v6 }
 0x397   : > { %v1466_v9 = vpop.xlane.xlu0 %1465 }
 0x398   : > { %vm1467_vm5 = vcmp.eq.f32.partialorder %v1464_v6, %v1466_v9  ;;  %v1472_v12 = vcvt.f32.s32 %v1466_v9  ;;  %v3225_v6 = vld [vmem:[%s3919_s10 + $0x28] sm:$0xff]   ;;  %v3227_v9 = vld [vmem:[%s3919_s10 + $0x98] sm:$0xff]  }
 0x399   : > { %v1468_v11 = vsel %vm1467_vm5, %v1463_v10, inf  ;;  %v3228_v10 = vld [vmem:[%s3919_s10 + $0x70] sm:$0xff]  }
 0x39a   : > { %1469 = vmin.xlane.f32.xlu1 %v1468_v11  ;;  %v1473_v14 = vshll.u32 %v1472_v12, 16  ;;  %v3229_v11 = vld [vmem:[%s3919_s10 + $0x30] sm:$0xff]   ;;  %v3230_v12 = vld [vmem:[%s3919_s10 + $0xe0] sm:$0xff]  }
 0x427   : > { %v1470_v13 = vpop.xlane.xlu1 %1469 }
 0x428   : > { %v1471_v15 = vcvt.f32.s32 %v1470_v13  ;;  %v3231_v13 = vld [vmem:[%s3919_s10 + $0xa0] sm:$0xff]  }
 0x42a   : > { %v1474_v16 = vadd.s32 %v1473_v14, %v1471_v15  ;;  %v3232_v14 = vld [vmem:[%s3919_s10 + $0x78] sm:$0xff]  }
 0x42b   : > { %v3233_v15 = vld [vmem:[%s3919_s10 + $0x38] sm:$0xff]  }
 0x42c   : > { %vm1475_vm6 = vcmp.eq.s32.totalorder %v1453_v0, %v1474_v16  ;;  %v3234_v16 = vld [vmem:[%s3919_s10 + $0xe8] sm:$0xff]  }
 0x42d   : > { %v1476_v17 = vsel %vm1475_vm6, -inf, %v3129_v50  ;;  %v3217_v50 = vld [vmem:[%s3919_s10 + $0x18] sm:$0xff]  }
 0x42e   : > { %v1477_v18 = vsel %vm1454_vm3, %v1476_v17, -inf }
 0x42f   : > { %1478 = vmax.xlane.f32.xlu1 %v1477_v18  ;;  %v3236_v18 = vld [vmem:[%s3919_s10 + $0xf0] sm:$0xff]  }
 0x4bc   : > { %v1479_v19 = vpop.xlane.xlu1 %1478 }
 0x4bd   : > { %vm1480_vm7 = vcmp.eq.f32.partialorder %v1476_v17, %v1479_v19  ;;  %v3235_v17 = vld [vmem:[%s3919_s10 + $0xa8] sm:$0xff]   ;;  %v3238_v19 = vld [vmem:[%s3919_s10 + $0xb0] sm:$0xff]  }
 0x4be   : > { %v1481_v21 = vsel %vm1480_vm7, %v1453_v0, 8 }
 0x4bf   : > { %v1482_v22 = vsel %vm1454_vm3, %v1481_v21, 2147483647  ;;  %v3239_v21 = vld [vmem:[%s3919_s10 + $0xf8] sm:$0xff]  }
 0x4c0   : > { %v1484_v23 = vshra.s32 %v1482_v22, 16  ;;  %v1483_v25 = vand.u32 65535, %v1482_v22  ;;  %v3241_v22 = vld [vmem:[%s3919_s10 + $0xb8] sm:$0xff]  }
 0x4c2   : > { %v1486_v24 = vcvt.s32.f32 %v1484_v23  ;;  %v1485_v27 = vcvt.s32.f32 %v1483_v25  ;;  %v3809_v23 = vshrl.u32 %v1452_v3, 7  ;;  %v1502_v25 = vstv %s1501_s15 }
 0x4c4   : > { %1487 = vmin.xlane.f32.xlu0 %v1486_v24  ;;  %v1741_v30 = vsub.s32 2, %v3809_v23  ;;  %v1745_v3 = vsub.s32 3, %v3809_v23 }
 0x551   : > { %v1488_v26 = vpop.xlane.xlu0 %1487 }
 0x552   : > { %vm1489_vm8 = vcmp.eq.f32.partialorder %v1486_v24, %v1488_v26  ;;  %v1494_v33 = vcvt.f32.s32 %v1488_v26  ;;  %v1733_v24 = vsub.s32 0, %v3809_v23  ;;  %v1729_v26 = vld [vmem:[%s3916_s7] sm:$0x1f] }
 0x553   : > { %v1490_v28 = vsel %vm1489_vm8, %v1485_v27, inf  ;;  %v1737_v27 = vsub.s32 1, %v3809_v23 }
 0x554   : > { %1491 = vmin.xlane.f32.xlu1 %v1490_v28  ;;  %v1495_v35 = vshll.u32 %v1494_v33, 16  ;;  %v1728_v28 = vsub.f32 1.0, %v1502_v25  ;;  %v1734_v29 = vrot.slane %v1729_v26, %v1733_v24 }
 0x555   : > { %v1738_v32 = vrot.slane %v1729_v26, %v1737_v27 }
 0x556   : > { %v1756_v33 = vmul.f32 %v1734_v29, %v1728_v28 }
 0x5e1   : > { %v1492_v34 = vpop.xlane.xlu1 %1491 }
 0x5e2   : > { %v1493_v36 = vcvt.f32.s32 %v1492_v34  ;;  %v2187_v34 = vmul.f32 %v2628_v31, %v1728_v28 }
 0x5e4   : > { %v1496_v37 = vadd.s32 %v1495_v35, %v1493_v36  ;;  %v1742_v35 = vrot.slane %v1729_v26, %v1741_v30  ;;  %v1749_v36 = vsub.s32 4, %v3809_v23 }
 0x5e6   : > { %vm1497_vm9 = vcmp.eq.s32.totalorder %v1453_v0, %v1496_v37  ;;  %v3220_v0 = vld [vmem:[%s3919_s10 + $0x60] sm:$0xff]  }
 0x5e7   : > { %vm1498_vm10 = vmor %vm1475_vm6, %vm1497_vm9 }
 0x5e8   : > { %v2610_v39 = vsel %vm1498_vm10, 1.0, %v3337_v8 }
 0x5e9   : > { %2611 = vmatmul.mubr.msk.f32.vlgmr.msra.gmra.mrb[2].mxu0 %vm1454_vm3, %v2610_v39  ;;  %3006 = vmatmul.mubr.msk.f32.vlgmr.msra.gmra.mrb[2].mxu1 %vm1454_vm3, %v2610_v39 }
 0x5ea   : > { %1583 = vmatpush1.msra.mxu0 %v1505_v38  ;;  %1646 = vmatprep.mubr.f32.mxu0 %v3337_v8 }
 0x5eb   : > { %2990 = vmatprep.subr.mxu0 %v3337_v8  ;;  %2784 = vmatpush3.bf16.msra.mxu1 %v3215_v45 }
 0x5ec   : > { %2785 = vmatprep.subr.bf16.mxu1 %v3218_v63 }
 0x5ed   : > { %2612 = vmatmul.mubr.msk.f32.vlgmr.msra.gmra.mrb[4].mxu0 %vm1454_vm3, %v2610_v39 }
 0x5ee   : > { %2991 = vmatpush3.msra.mxu0 %v1507_v40  ;;  %2992 = vmatprep.mubr.msk.f32.mxu0 %vm3336_vm0, %v3337_v8  ;;  %v1746_v40 = vrot.slane %v1729_v26, %v1745_v3 }
 0x5ef   : > { %1861 = vmatprep.subr.bf16.mxu0 %v3196_v41  ;;  %2786 = vmatpush3.bf16.msra.mxu1 %v3219_v57 }
 0x5f0   : > { %2787 = vmatprep.subr.bf16.mxu1 %v3222_v2 }
 0x5f1   : > { %2993 = vmatmul.mubr.msk.f32.vlgmr.msra.gmra.mrb[6].mxu0 %vm1454_vm3, %v2610_v39  ;;  %v1757_v39 = vmul.f32 %v1738_v32, %v1728_v28 }
 0x5f2   : > { %1862 = vmatpush1.bf16.msra.mxu0 %v3194_v42  ;;  %1893 = vmatprep.mubr.bf16.mxu0 %v3338_v46 }
 0x5f3   : > { %1863 = vmatprep.subr.bf16.mxu0 %v3199_v43  ;;  %2788 = vmatpush3.bf16.msra.mxu1 %v3223_v4 }
 0x5f4   : > { %2789 = vmatprep.subr.bf16.mxu1 %v3226_v7 }
 0x5f6   : > { %1864 = vmatpush1.bf16.msra.mxu0 %v3197_v44 }
 0x5f7   : > { %1902 = vmatprep.subr.bf16.mxu0 %v3202_v47  ;;  %2790 = vmatpush3.bf16.msra.mxu1 %v3227_v9 }
 0x5f8   : > { %2791 = vmatprep.subr.bf16.mxu1 %v3230_v12 }
 0x5f9   : > { %2624 = vmatmul.mubr.msk.bf16.vlgmr.msra.gmra.mrb[8].mxu0 %vm402_vm1, %v1766_v48 }
 0x5fa   : > { %1903 = vmatpush1.bf16.msra.mxu0 %v3200_v49  ;;  %1934 = vmatprep.mubr.bf16.mxu0 %v3338_v46  ;;  %v1758_v49 = vmul.f32 %v1742_v35, %v1728_v28 }
 0x5fb   : > { %1904 = vmatprep.subr.bf16.mxu0 %v3205_v51  ;;  %2792 = vmatpush3.bf16.msra.mxu1 %v3231_v13  ;;  %v1750_v51 = vrot.slane %v1729_v26, %v1749_v36 }
 0x5fc   : > { %2793 = vmatprep.subr.bf16.mxu1 %v3234_v16 }
 0x5fe   : > { %1905 = vmatpush1.bf16.msra.mxu0 %v3203_v52 }
 0x5ff   : > { %2995 = vmatprep.subr.bf16.mxu0 %v3337_v8  ;;  %2794 = vmatpush3.bf16.msra.mxu1 %v3235_v17 }
 0x600   : > { %2795 = vmatprep.subr.bf16.mxu1 %v3236_v18 }
 0x601   : > { %2625 = vmatmul.mubr.msk.bf16.vlgmr.msra.gmra.mrb[12].mxu0 %vm402_vm1, %v1766_v48 }
 0x602   : > { %2996 = vmatpush3.bf16.msra.mxu0 %v3206_v20  ;;  %2999 = vmatprep.mubr.msk.bf16.mxu0 %vm3336_vm0, %v3337_v8 }
 0x603   : > { %2997 = vmatprep.subr.bf16.mxu0 %v3337_v8  ;;  %2796 = vmatpush3.bf16.msra.mxu1 %v3238_v19 }
 0x604   : > { %2797 = vmatprep.subr.bf16.mxu1 %v3239_v21 }
 0x606   : > { %2998 = vmatpush3.bf16.msra.mxu0 %v3207_v53  ;;  %v1759_v53 = vmul.f32 %v1746_v40, %v1728_v28 }
 0x607   : > { %2761 = vmatprep.subr.bf16.mxu0 %v3208_v54  ;;  %2798 = vmatpush3.bf16.msra.mxu1 %v3241_v22 }
 0x609   : > { %3000 = vmatmul.mubr.msk.bf16.vlgmr.msra.gmra.mrb[16].mxu0 %vm402_vm1, %v1766_v48 }
 0x60a   : > { %2762 = vmatpush3.bf16.msra.mxu0 %v3209_v55 }
 0x60b   : > { %2763 = vmatprep.subr.bf16.mxu0 %v3210_v56 }
 0x60e   : > { %2764 = vmatpush3.bf16.msra.mxu0 %v3211_v58 }
 0x60f   : > { %2765 = vmatprep.subr.bf16.mxu0 %v3212_v59  ;;  %v1760_v59 = vmul.f32 %v1750_v51, %v1728_v28 }
 0x612   : > { %2766 = vmatpush3.bf16.msra.mxu0 %v3213_v60 }
 0x613   : > { %2767 = vmatprep.subr.bf16.mxu0 %v3216_v62 }
 0x616   : > { %2768 = vmatpush3.bf16.msra.mxu0 %v3217_v50  ;;  %v1779_v50 = vld [vmem:[%s3918_s9] sm:$0x1f] }
 0x617   : > { %2769 = vmatprep.subr.bf16.mxu0 %v3220_v0  ;;  %v1784_v57 = vrot.slane %v1779_v50, %v1733_v24  ;;  %v1788_v0 = vrot.slane %v1779_v50, %v1737_v27  ;;  %v1792_v12 = vrot.slane %v1779_v50, %v1741_v30  ;;  %v1800_v32 = vrot.slane %v1779_v50, %v1749_v36 }
 0x61a   : > { %2770 = vmatpush3.bf16.msra.mxu0 %v3221_v1 }
 0x61b   : > { %2771 = vmatprep.subr.bf16.mxu0 %v3224_v5 }
 0x61e   : > { %2772 = vmatpush3.bf16.msra.mxu0 %v3225_v6 }
 0x61f   : > { %2773 = vmatprep.subr.bf16.mxu0 %v3228_v10 }
 0x622   : > { %2774 = vmatpush3.bf16.msra.mxu0 %v3229_v11 }
 0x623   : > { %2775 = vmatprep.subr.bf16.mxu0 %v3232_v14  ;;  %v1796_v14 = vrot.slane %v1779_v50, %v1745_v3 }
 0x626   : > { %2776 = vmatpush3.bf16.msra.mxu0 %v3233_v15 }
 0x627   : > { %3008 = vmatprep.subr.bf16.mxu0 %v3337_v8 }
 0x6bc   : > { %v1577_v37 = vpop.f32.mrb[2].mxu0  ;;  %v2177_v38 = vpop.f32.mrb[2].mxu1 }
 0x6bd   : > { %v1723_v41 = vmul.f32 %v1577_v37, %v1502_v25  ;;  %v2181_v42 = vmul.f32 %v2177_v38, %v1502_v25  ;;  %v1579_v43 = vpop.f32.mrb[3].mxu0  ;;  %v3007_v44 = vpop.f32.mrb[3].mxu1 }
 0x6be   : > { %v1724_v46 = vmul.f32 %v1579_v43, %v1502_v25 }
 0x6bf   : > { %v3822_v47 = vadd.f32 %v1756_v33, %v1723_v41  ;;  %v3824_v48 = vadd.f32 %v2187_v34, %v2181_v42 }
 0x6c0   : > { %v3826_v52 = vadd.f32 %v1757_v39, %v1724_v46  ;;  %v1648_v20 = vpop.f32.mrb[4].mxu0 }
 0x6c1   : > { %v1725_v54 = vmul.f32 %v1648_v20, %v1502_v25  ;;  %v1650_v55 = vpop.f32.mrb[5].mxu0 }
 0x6c2   : > { %v1726_v56 = vmul.f32 %v1650_v55, %v1502_v25 }
 0x6c3   : > { %v3828_v58 = vadd.f32 %v1758_v49, %v1725_v54 }
 0x6c4   : > { %v3830_v60 = vadd.f32 %v1759_v53, %v1726_v56  ;;  %v1719_v61 = vpop.f32.mrb[6].mxu0 }
 0x6c5   : > { %v1727_v45 = vmul.f32 %v1719_v61, %v1502_v25  ;;  %v2994_v62 = vpop.f32.mrb[7].mxu0 }
 0x6c7   : > { %v3835_v63 = vadd.f32 %v1760_v59, %v1727_v45 }
 0x6cc   : > { %v1895_v1 = vpop.f32.mrb[8].mxu0 }
 0x6cd   : > { %v1896_v2 = vadd.f32 %v1895_v1, %v1784_v57  ;;  %v1897_v4 = vpop.f32.mrb[9].mxu0  ;;  %v3237_v1 = vld [vmem:[%s3919_s10 + $0x100] sm:$0xff]  }
 0x6ce   : > { %v1898_v5 = vadd.f32 %v1897_v4, %v1788_v0  ;;  %v1899_v6 = vpop.f32.mrb[10].mxu0 }
 0x6cf   : > { %v1988_v7 = vmul.f32 0.044715, %v1896_v2  ;;  %v1900_v9 = vpop.f32.mrb[11].mxu0  ;;  %v1983_v20 = vmul.f32 0.5, %v1896_v2 }
 0x6d0   : > { %v1989_v10 = vmul.f32 0.044715, %v1898_v5  ;;  %v1984_v55 = vmul.f32 0.5, %v1898_v5 }
 0x6d1   : > { %v1993_v11 = vmul.f32 %v1988_v7, %v1896_v2 }
 0x6d2   : > { %v1994_v13 = vmul.f32 %v1989_v10, %v1898_v5 }
 0x6d3   : > { %v1998_v15 = vmul.f32 %v1993_v11, %v1896_v2 }
 0x6d4   : > { %v1999_v16 = vmul.f32 %v1994_v13, %v1898_v5  ;;  %v1936_v17 = vpop.f32.mrb[12].mxu0 }
 0x6d5   : > { %v2003_v18 = vadd.f32 %v1998_v15, %v1896_v2  ;;  %v1937_v19 = vadd.f32 %v1936_v17, %v1792_v12  ;;  %v1938_v21 = vpop.f32.mrb[13].mxu0  ;;  %v3242_v15 = vld [vmem:[%s3919_s10 + $0x110] sm:$0xff]  }
 0x6d6   : > { %v1939_v22 = vadd.f32 %v1938_v21, %v1796_v14  ;;  %v1940_v23 = vpop.f32.mrb[14].mxu0  ;;  %v2004_v24 = vadd.f32 %v1999_v16, %v1898_v5 }
 0x6d7   : > { %v2008_v25 = vmul.f32 0.7978846, %v2003_v18  ;;  %v1990_v26 = vmul.f32 0.044715, %v1937_v19  ;;  %v1941_v27 = vpop.f32.mrb[15].mxu0  ;;  %v1985_v6 = vmul.f32 0.5, %v1937_v19 }
 0x6d8   : > { %v1991_v28 = vmul.f32 0.044715, %v1939_v22  ;;  %v2009_v29 = vmul.f32 0.7978846, %v2004_v24  ;;  %v1986_v5 = vmul.f32 0.5, %v1939_v22 }
 0x6d9   : > { %3246 = vtanh.f32 %v2008_v25  ;;  %v1995_v31 = vmul.f32 %v1990_v26, %v1937_v19 }
 0x6da   : > { %v1996_v30 = vmul.f32 %v1991_v28, %v1939_v22  ;;  %3248 = vtanh.f32 %v2009_v29 }
 0x6db   : > { %v2000_v3 = vmul.f32 %v1995_v31, %v1937_v19 }
 0x6dc   : > { %v2001_v33 = vmul.f32 %v1996_v30, %v1939_v22  ;;  %v1977_v34 = vpop.f32.mrb[16].mxu0 }
 0x6dd   : > { %v2005_v35 = vadd.f32 %v2000_v3, %v1937_v19  ;;  %v1978_v37 = vadd.f32 %v1977_v34, %v1800_v32  ;;  %v3001_v38 = vpop.f32.mrb[17].mxu0 }
 0x6de   : > { %v1980_v39 = vpop.f32.mrb[18].mxu0  ;;  %v2006_v40 = vadd.f32 %v2001_v33, %v1939_v22 }
 0x6df   : > { %v2010_v41 = vmul.f32 0.7978846, %v2005_v35  ;;  %v1992_v42 = vmul.f32 0.044715, %v1978_v37  ;;  %v3002_v43 = vpop.f32.mrb[19].mxu0  ;;  %v1987_v16 = vmul.f32 0.5, %v1978_v37 }
 0x6e0   : > { %v2011_v44 = vmul.f32 0.7978846, %v2006_v40 }
 0x6e1   : > { %3250 = vtanh.f32 %v2010_v41  ;;  %v1997_v46 = vmul.f32 %v1992_v42, %v1978_v37 }
 0x6e2   : > { %3252 = vtanh.f32 %v2011_v44 }
 0x6e3   : > { %v3247_v49 = vpop.eup %3246  ;;  %v2002_v51 = vmul.f32 %v1997_v46, %v1978_v37 }
 0x6e4   : > { %v3249_v36 = vpop.eup %3248  ;;  %v2018_v53 = vadd.f32 1.0, %v3247_v49 }
 0x6e5   : > { %v2007_v54 = vadd.f32 %v2002_v51, %v1978_v37  ;;  %v2019_v56 = vadd.f32 1.0, %v3249_v36 }
 0x6e6   : > { %v2023_v59 = vmul.f32 %v2018_v53, %v1983_v20 }
 0x6e7   : > { %v2012_v61 = vmul.f32 0.7978846, %v2007_v54  ;;  %v2024_v45 = vmul.f32 %v2019_v56, %v1984_v55 }
 0x6e8   : > { %v2028_v62 = vmul.f32 %v2023_v59, %v3822_v47  ;;  %v3240_v47 = vld [vmem:[%s3919_s10 + $0x108] sm:$0xff]  }
 0x6e9   : > { %3254 = vtanh.f32 %v2012_v61  ;;  %v2029_v50 = vmul.f32 %v2024_v45, %v3826_v52 }
 0x6ea   : > { %v2033_v2 = vpack.c.bf16 %v2028_v62, %v2028_v62 }
 0x6eb   : > { %v3251_v57 = vpop.eup %3250  ;;  %v2034_v0 = vpack.c.bf16 %v2029_v50, %v2029_v50 }
 0x6ec   : > { %v3253_v4 = vpop.eup %3252  ;;  %v2020_v7 = vadd.f32 1.0, %v3251_v57 }
 0x6ed   : > { %2440 = vmatprep.mubr.bf16.mxu0 %v2034_v0  ;;  %v2021_v9 = vadd.f32 1.0, %v3253_v4 }
 0x6ee   : > { %2441 = vmatmul.mubr.bf16.vlgmr.msra.gmra.mrb[20].mxu0 %v2033_v2  ;;  %v2025_v10 = vmul.f32 %v2020_v7, %v1985_v6 }
 0x6ef   : > { %3009 = vmatpush3.bf16.msra.mxu0 %v3237_v1  ;;  %v2026_v52 = vmul.f32 %v2021_v9, %v1986_v5  ;;  %3016 = vmatprep.mubr.msk.bf16.mxu0 %vm3336_vm0, %v3337_v8 }
 0x6f0   : > { %3010 = vmatprep.subr.bf16.mxu0 %v3337_v8  ;;  %v2030_v11 = vmul.f32 %v2025_v10, %v3828_v58  ;;  %v3243_v58 = vld [vmem:[%s3919_s10 + $0x118] sm:$0xff]  }
 0x6f1   : > { %v2031_v12 = vmul.f32 %v2026_v52, %v3830_v60 }
 0x6f2   : > { %v2035_v17 = vpack.c.bf16 %v2030_v11, %v2030_v11 }
 0x6f3   : > { %v3255_v13 = vpop.eup %3254  ;;  %3011 = vmatpush3.bf16.msra.mxu0 %v3240_v47  ;;  %v2036_v14 = vpack.c.bf16 %v2031_v12, %v2031_v12 }
 0x6f4   : > { %3012 = vmatprep.subr.bf16.mxu0 %v3337_v8  ;;  %v2022_v18 = vadd.f32 1.0, %v3255_v13 }
 0x6f5   : > { %2480 = vmatprep.mubr.bf16.mxu1 %v2036_v14 }
 0x6f6   : > { %2481 = vmatmul.mubr.bf16.vlgmr.msra.gmra.mrb[4].mxu1 %v2035_v17  ;;  %v2027_v19 = vmul.f32 %v2022_v18, %v1987_v16 }
 0x6f7   : > { %3013 = vmatpush3.bf16.msra.mxu0 %v3242_v15 }
 0x6f8   : > { %3014 = vmatprep.subr.bf16.mxu0 %v3337_v8  ;;  %v2032_v60 = vmul.f32 %v2027_v19, %v3835_v63 }
 0x6fa   : > { %v2037_v21 = vpack.c.bf16 %v2032_v60, %v2032_v60 }
 0x6fb   : > { %3015 = vmatpush3.bf16.msra.mxu0 %v3243_v58 }
 0x6fe   : > { %3017 = vmatmul.mubr.msk.bf16.vlgmr.msra.gmra.mrb[24].mxu0 %vm911_vm2, %v2037_v21 }
 0x7c1   : > { %v2777_v22 = vpop.f32.mrb[20].mxu0 }
 0x7c2   : > { %v2778_v23 = vpop.f32.mrb[21].mxu0 }
 0x7c3   : > { %v2779_v24 = vadd.f32 %v2778_v23, %v2777_v22  ;;  %v2780_v25 = vpop.f32.mrb[22].mxu0 }
 0x7c4   : > { %v2781_v26 = vpop.f32.mrb[23].mxu0 }
 0x7c5   : > { %v2443_v27 = vadd.f32 %v2779_v24, %v3824_v48 }
 0x7c9   : > { %v2799_v28 = vpop.f32.mrb[4].mxu1 }
 0x7ca   : > { %v2800_v29 = vpop.f32.mrb[5].mxu1 }
 0x7cb   : > { %v2801_v31 = vadd.f32 %v2800_v29, %v2799_v28  ;;  %v2802_v8 = vpop.f32.mrb[6].mxu1 }
 0x7cc   : > { %v2803_v32 = vpop.f32.mrb[7].mxu1 }
 0x7cd   : > { %v2483_v63 = vadd.f32 %v2801_v31, %v2443_v27 }
 0x7d1   : > { %v2522_v30 = vpop.f32.mrb[24].mxu0 }
 0x7d2   : > { %v2523_v3 = vadd.f32 %v2522_v30, %v2483_v63  ;;  %v3018_v33 = vpop.f32.mrb[25].mxu0 }
 0x7d3   : > { %v2525_v48 = vpop.f32.mrb[26].mxu0 }
 0x7d4   : > { %v3019_v34 = vpop.f32.mrb[27].mxu0  ;;  %2528 = vst.msk [vmem:[%s384_s30] sm:$0xff] %vm402_vm1, %v2523_v3 }
 0x7d5   : > { %3281 = shalt.err (!%p3278_p8)
}
 0x7d6   : > { %s3282_s23 = scalar_lea.hbm %s3866_s20, 128  ;;  %s3286_s19 = scalar_lea.hbm %s3921_s12, 256 }
 0x7d7   : > { %p3283_p9 = scmp.ne.s32.totalorder %s3866_s20, %s3282_s23  ;;  %p3287_p0 = scmp.lt.u32.totalorder %s3866_s20, %s3921_s12 }
 0x7d8   : > { %p3288_p1 = scmp.lt.u32.totalorder %s3286_s19, %s3282_s23  ;;  %p3290_p3 = scmp.lt.u32.totalorder %s3282_s23, %s3866_s20 }
 0x7d9   : > { %p3284_p12 = pnand %p3283_p9, %p3446_p10 }
 0x7da   : > { %p3289_p2 = por %p3288_p1, %p3287_p0 }
 0x7db   : > { %p3285_p13 = pneg %p3284_p12 }
 0x7dc   : > { %p3291_p4 = por %p3290_p3, %p3289_p2 }
 0x7de   : > { %p3292_p5 = pnand %p3291_p4, %p3285_p13 }
 0x7e0   : > { %3295 = shalt.err (!%p3292_p5)
}
 0x7e1   : > { %3150 = dma.vmem_to_hbm [thread:$0]  (%p3446_p10), %s3868_s14, 128, %s3866_s20, %s2530_s29  }
 0x7e2 PF: > { %p3156_p6 = scmp.ge.s32.totalorder %s3332_s28, 2  ;;  %s2555_s21 = sand.u32 1, %s3320_s26  }
 0x7e3   : > { %s2556_s25 = scalar_lea.sflag [#allocation5], %s2555_s21 }
 0x7e4   : > { %p3153_p7 = pnand %p3156_p6, %p3450_p11 }
 0x7e6   : > { %3315 = dma.done.wait (!%p3153_p7), %s2556_s25, 128  }
 0x7e7   : > { %3317 = vsyncadd (!%p3153_p7), %s2556_s25, 4294967168  ;;  %p28_p8 = scmp.ge.s32.totalorder %s3433_s13, 4   ;;  %s3924_s26 = smov %s3324_s27 }
 0x7e8   : > { %s3925_s27 = smov %s3328_s0  ;;  %s3926_s0 = smov %s3444_s16 }
 0x7e9   : > { %s3927_s28 = smov %s3433_s13  ;;  %30 = sbr.rel (!%p28_p8) target bundleno = 18 (0x12), region = 99 }
 0x7f0   :  { %2561 = vsyncpa [#allocation5], 1 }
 0x7f1   :  { %2563 = vsyncpa [#allocation5 + $0x1], 1 }

</bundles_post_ra>
